<compile_context>
chip_gen: v7x
topology: tpu7x:2x2x1
jax: 0.10.0
libtpu: 0.0.40
codegen_flags: <defaults>
</compile_context>

<pallas_src>
import functools
import math

import jax
import jax.numpy as jnp
import numpy as np
from jax import lax
from jax.experimental import pallas as pl
from jax.experimental.pallas import tpu as pltpu


# ----------------------------- kernel ---------------------------------------
def _mdwr_kernel(x_ref, m_ref, wa_ref, wb_ref, p_ref, o_ref, *, W):
    """One grid step == one DepthWiseRes block.

    Activation layout: (C, N*H*W) float32.  The residual chain is carried in
    o_ref, which stays resident in VMEM across grid steps (constant index_map)
    and is flushed to HBM once after the last block.
    """
    b = pl.program_id(0)
    C, NHW = x_ref.shape
    G = wa_ref.shape[1]
    inv_n = 1.0 / NHW
    eps = 1e-5

    # Block 0 starts from the kernel input; later blocks read the carried act.
    @pl.when(b == 0)
    def _():
        o_ref[...] = x_ref[...]

    x = o_ref[...]                        # (C, NHW) residual input of this block

    wa = wa_ref[0]                        # (G, C + 9): [w1 | depthwise taps]
    w1 = wa[:, :C]                        # (G, C)  1x1 conv C->G
    w2 = wa[:, C:C + 9]                   # (G, 9)  depthwise 3x3 taps, ky*3+kx
    w3 = wb_ref[0]                        # (C, G)  1x1 conv G->C
    prm = p_ref[0]                        # (max(C,G), 8) packed BN/PReLU params
    g1, b1, a1 = prm[:G, 0:1], prm[:G, 1:2], prm[:G, 2:3]
    g2, b2, a2 = prm[:G, 3:4], prm[:G, 4:5], prm[:G, 5:6]
    g3, b3 = prm[:C, 6:7], prm[:C, 7:8]

    def conv1x1(w, v):
        # (O, I) x (I, NHW) -> (O, NHW).  MXU matmul for realistic channel
        # counts; exact VPU broadcast-FMA unroll only when C, G are tiny.
        O, I = w.shape
        if max(O, I) >= 8:
            return jnp.dot(w, v, preferred_element_type=jnp.float32,
                           precision=lax.Precision.HIGHEST)
        out = w[:, 0:1] * v[0:1, :]
        for i in range(1, I):
            out = out + w[:, i:i + 1] * v[i:i + 1, :]
        return out

    def bn(h, gamma, beta):
        # training-mode batch stats, biased variance, two-pass (x - mu)^2 form
        mu = jnp.sum(h, axis=1, keepdims=True) * inv_n
        d = h - mu
        var = jnp.sum(d * d, axis=1, keepdims=True) * inv_n
        scale = gamma * lax.rsqrt(var + eps)        # rsqrt lands on the EUP
        return d * scale + beta                     # one FMA per element

    def prelu(h, alpha):
        return jnp.where(h > 0, h, h * alpha)

    # ---- ConvBnPrelu #1: 1x1 conv C->G, BN, PReLU ---------------------------
    h = prelu(bn(conv1x1(w1, x), g1, b1), a1)

    # ---- ConvBnPrelu #2: depthwise 3x3 (stride 1, pad 1) via lane rolls -----
    # m_ref rows: 0: (h-1,w) exists, 1: (h+1,w), 2: (h,w-1), 3: (h,w+1)
    row_lo = m_ref[0:1, :]
    row_hi = m_ref[1:2, :]
    col_lo = m_ref[2:3, :]
    col_hi = m_ref[3:4, :]
    rmask = {-1: row_lo, 0: None, 1: row_hi}
    cmask = {-1: col_lo, 0: None, 1: col_hi}

    acc = w2[:, 4:5] * h                  # center tap: no roll, no mask
    for ky in range(3):
        for kx in range(3):
            dy, dx = ky - 1, kx - 1
            if dy == 0 and dx == 0:
                continue
            s = dy * W + dx               # flattened-pixel offset of this tap
            t = ky * 3 + kx
            rm, cm = rmask[dy], cmask[dx]
            msk = rm if cm is None else (cm if rm is None else rm * cm)
            src = pltpu.roll(h, shift=(-s) % NHW, axis=1)
            acc = acc + w2[:, t:t + 1] * (msk * src)
    h = prelu(bn(acc, g2, b2), a2)

    # ---- ConvBn #3: 1x1 conv G->C, BN; residual add; carry in o_ref --------
    y = bn(conv1x1(w3, h), g3, b3)
    o_ref[...] = x + y


# ----------------------------- wrapper ---------------------------------------
def _edge_masks(N, H, W):
    """(4, N*H*W) f32 validity masks for the 3x3 taps (zero padding = 1):
    row 0: (h-1, w) exists, row 1: (h+1, w), row 2: (h, w-1), row 3: (h, w+1)."""
    hh = np.arange(H)[:, None]
    ww = np.arange(W)[None, :]
    base = [
        np.broadcast_to(hh >= 1, (H, W)),
        np.broadcast_to(hh <= H - 2, (H, W)),
        np.broadcast_to(ww >= 1, (H, W)),
        np.broadcast_to(ww <= W - 2, (H, W)),
    ]
    rows = [np.broadcast_to(m.astype(np.float32)[None], (N, H, W)).reshape(-1)
            for m in base]
    return jnp.asarray(np.stack(rows))                              # (4, N*H*W)


@jax.jit
def multi_depthwise_res(x, params):
    """x: (N, C, H, W) (PyTorch NCHW). params: list of per-block dicts."""
    N, C, H, W = x.shape
    nb = len(params)
    G = params[0]["w1"].shape[0]
    P = max(C, G)
    NHW = N * H * W

    # lane-dense channel-major activation layout (C, N*H*W), f32 compute
    # TODO(synk): the NCHW <-> (C, NHW) transposes are extra HBM passes; keep
    # the channel-major layout across adjacent network ops to avoid them.
    x2 = jnp.transpose(x, (1, 0, 2, 3)).reshape(C, NHW).astype(jnp.float32)
    masks = _edge_masks(N, H, W)                                    # (4, NHW)

    # pack per-block params into 3 slabs (leading block axis via index_map)
    WA = jnp.stack([jnp.concatenate([p["w1"], p["w2"]], axis=1)
                    for p in params])                               # (nb, G, C+9)
    WB = jnp.stack([p["w3"] for p in params])                       # (nb, C, G)

    def _row(v):
        return jnp.pad(v.astype(jnp.float32), (0, P - v.shape[0]))
    PRM = jnp.stack([
        jnp.stack([_row(p[k]) for k in
                   ("g1", "b1", "a1", "g2", "b2", "a2", "g3", "b3")], axis=1)
        for p in params])                                           # (nb, P, 8)

    full2d = lambda b: (0, 0)
    blk3 = lambda b: (b, 0, 0)

    grid_spec = pltpu.PrefetchScalarGridSpec(
        num_scalar_prefetch=0,
        grid=(nb,),
        in_specs=[
            pl.BlockSpec((C, NHW), full2d),          # x (read at block 0 only)
            pl.BlockSpec((4, NHW), full2d),          # factored edge masks
            pl.BlockSpec((1, G, C + 9), blk3),       # [w1 | depthwise taps]
            pl.BlockSpec((1, C, G), blk3),           # w3
            pl.BlockSpec((1, P, 8), blk3),           # packed BN/PReLU params
        ],
        out_specs=pl.BlockSpec((C, NHW), full2d),    # resident; carries residual
    )

    # explicit scoped-VMEM budget: resident activation/mask/param buffers
    # (double-buffered) plus headroom, clamped to [32 MiB, 64 MiB]
    resident = 4 * (3 * C * NHW + 4 * NHW
                    + 2 * (G * (C + 9) + C * G + P * 8))
    vmem_limit = int(min(max(2 * resident + (4 << 20), 32 << 20), 64 << 20))

    y2 = pl.pallas_call(
        functools.partial(_mdwr_kernel, W=W),
        out_shape=jax.ShapeDtypeStruct((C, NHW), jnp.float32),
        grid_spec=grid_spec,
        input_output_aliases={0: 0},                 # donate x2's HBM buffer
        compiler_params=pltpu.CompilerParams(
            dimension_semantics=("arbitrary",),      # sequential residual chain
            vmem_limit_bytes=vmem_limit),
    )(x2, masks, WA, WB, PRM)

    return y2.reshape(C, N, H, W).transpose(1, 0, 2, 3).astype(x.dtype)


# ----------------------------- pure-JAX reference ----------------------------
def _bn_ref(h, gamma, beta, eps=1e-5):
    mu = jnp.mean(h, axis=(0, 2, 3), keepdims=True)
    var = jnp.mean((h - mu) ** 2, axis=(0, 2, 3), keepdims=True)
    return ((h - mu) * lax.rsqrt(var + eps) * gamma[None, :, None, None]
            + beta[None, :, None, None])


def _prelu_ref(h, alpha):
    a = alpha[None, :, None, None]
    return jnp.where(h > 0, h, h * a)


def _conv1x1_ref(x, w):            # w[o, i]: (N, Ci, H, W) -> (N, Co, H, W)
    out = x[:, 0:1] * w[:, 0][None, :, None, None]
    for i in range(1, x.shape[1]):
        out = out + x[:, i:i + 1] * w[:, i][None, :, None, None]
    return out


def _ref_block(x, p):
    N, C, H, W = x.shape
    h = _prelu_ref(_bn_ref(_conv1x1_ref(x, p["w1"]), p["g1"], p["b1"]), p["a1"])
    hp = jnp.pad(h, ((0, 0), (0, 0), (1, 1), (1, 1)))
    acc = jnp.zeros_like(h)
    for ky in range(3):
        for kx in range(3):
            w = p["w2"][:, ky * 3 + kx][None, :, None, None]
            acc = acc + w * hp[:, :, ky:ky + H, kx:kx + W]
    h = _prelu_ref(_bn_ref(acc, p["g2"], p["b2"]), p["a2"])
    y = _bn_ref(_conv1x1_ref(h, p["w3"]), p["g3"], p["b3"])
    return y + x


def multi_depthwise_res_ref(x, params):
    for p in params:
        x = _ref_block(x, p)
    return x


# ----------------------------- param init ------------------------------------
def init_params(key, C, G, num_block):
    blocks = []
    for b in range(num_block):
        ks = jax.random.split(jax.random.fold_in(key, b), 9)
        p = {
            # 1x1 conv C->G: torch weight (G, C, 1, 1) -> (G, C)
            "w1": jax.random.normal(ks[0], (G, C), jnp.float32) / math.sqrt(C),
            "g1": 1.0 + 0.1 * jax.random.normal(ks[1], (G,), jnp.float32),
            "b1": 0.1 * jax.random.normal(ks[2], (G,), jnp.float32),
            "a1": jnp.full((G,), 0.25, jnp.float32),        # PReLU default init
            # depthwise 3x3: torch weight (G, 1, 3, 3) -> (G, 9), row ky*3+kx
            "w2": jax.random.normal(ks[3], (G, 9), jnp.float32) / 3.0,
            "g2": 1.0 + 0.1 * jax.random.normal(ks[4], (G,), jnp.float32),
            "b2": 0.1 * jax.random.normal(ks[5], (G,), jnp.float32),
            "a2": jnp.full((G,), 0.25, jnp.float32),
            # 1x1 conv G->C: torch weight (C, G, 1, 1) -> (C, G)
            "w3": jax.random.normal(ks[6], (C, G), jnp.float32) / math.sqrt(G),
            "g3": 1.0 + 0.1 * jax.random.normal(ks[7], (C,), jnp.float32),
            "b3": 0.1 * jax.random.normal(ks[8], (C,), jnp.float32),
        }
        blocks.append(p)
    return blocks


# ----------------------------- main -------------------------------------------
if __name__ == "__main__":
    key = jax.random.PRNGKey(0)
    # MultiDepthWiseRes(num_block=2, channels=4, kernel=(3,3), stride=1,
    #                   padding=1, groups=4) on NCHW input (2, 4, 16, 16)
    N, C, H, W = 2, 4, 16, 16
    num_block, groups = 2, 4

    k_x, k_p = jax.random.split(key)
    x = jax.random.normal(k_x, (N, C, H, W), jnp.float32)
    params = init_params(k_p, C, groups, num_block)

    y = jax.block_until_ready(multi_depthwise_res(x, params))
    y_ref = multi_depthwise_res_ref(x, params)

    assert y.shape == x.shape and y.dtype == x.dtype
    np.testing.assert_allclose(np.asarray(y), np.asarray(y_ref), rtol=2e-3, atol=2e-3)
    print("KERNEL_OK")
</pallas_src>

<mosaic_0001>
module attributes {stable_mosaic.version = 11 : i64} {
  func.func @_mdwr_kernel(%arg0: i32, %arg1: memref<4x512xf32, #tpu.memory_space<vmem>>, %arg2: memref<4x512xf32, #tpu.memory_space<vmem>>, %arg3: memref<1x4x13xf32, #tpu.memory_space<vmem>>, %arg4: memref<1x4x4xf32, #tpu.memory_space<vmem>>, %arg5: memref<1x4x8xf32, #tpu.memory_space<vmem>>, %arg6: memref<4x512xf32, #tpu.memory_space<vmem>>) attributes {dimension_semantics = [#tpu.dimension_semantics<arbitrary>], iteration_bounds = array<i64: 2>, scalar_prefetch = 0 : i64, scratch_operands = 0 : i64, tpu.core_type = #tpu.core_type<tc>, window_params = [{pipeline_mode = #tpu.pipeline_mode<synchronous>, transform_indices = @transform_0, window_bounds = array<i64: 4, 512>}, {pipeline_mode = #tpu.pipeline_mode<synchronous>, transform_indices = @transform_1, window_bounds = array<i64: 4, 512>}, {transform_indices = @transform_2, window_bounds = array<i64: 1, 4, 13>}, {transform_indices = @transform_3, window_bounds = array<i64: 1, 4, 4>}, {transform_indices = @transform_4, window_bounds = array<i64: 1, 4, 8>}, {pipeline_mode = #tpu.pipeline_mode<synchronous>, transform_indices = @transform_5, window_bounds = array<i64: 4, 512>}]} {
    %c0_i32 = arith.constant 0 : i32
    %0 = arith.cmpi eq, %arg0, %c0_i32 : i32
    %1 = arith.extui %0 : i1 to i32
    %c0_i32_0 = arith.constant 0 : i32
    %2 = arith.cmpi ne, %1, %c0_i32_0 : i32
    scf.if %2 {
      %c0_34 = arith.constant 0 : index
      %c0_35 = arith.constant 0 : index
      %202 = vector.load %arg1[%c0_34, %c0_35] : memref<4x512xf32, #tpu.memory_space<vmem>>, vector<4x512xf32>
      %c0_36 = arith.constant 0 : index
      %c0_37 = arith.constant 0 : index
      %203 = vector.load %arg6[%c0_36, %c0_37] : memref<4x512xf32, #tpu.memory_space<vmem>>, vector<4x512xf32>
      tpu.vector_store %arg6[%c0_36, %c0_37], %202 {strides = array<i32>} : memref<4x512xf32, #tpu.memory_space<vmem>>, vector<4x512xf32>,
    } else {
    }
    %c0 = arith.constant 0 : index
    %c0_1 = arith.constant 0 : index
    %3 = vector.load %arg6[%c0, %c0_1] : memref<4x512xf32, #tpu.memory_space<vmem>>, vector<4x512xf32>
    %c0_2 = arith.constant 0 : index
    %c0_3 = arith.constant 0 : index
    %c0_4 = arith.constant 0 : index
    %4 = vector.load %arg3[%c0_2, %c0_3, %c0_4] : memref<1x4x13xf32, #tpu.memory_space<vmem>>, vector<1x4x13xf32>
    %5 = vector.shape_cast %4 : vector<1x4x13xf32> to vector<4x13xf32>
    %6 = vector.extract_strided_slice %5 {offsets = [0, 0], sizes = [4, 4], strides = [1, 1]} : vector<4x13xf32> to vector<4x4xf32>
    %7 = vector.extract_strided_slice %5 {offsets = [0, 4], sizes = [4, 9], strides = [1, 1]} : vector<4x13xf32> to vector<4x9xf32>
    %c0_5 = arith.constant 0 : index
    %c0_6 = arith.constant 0 : index
    %c0_7 = arith.constant 0 : index
    %8 = vector.load %arg4[%c0_5, %c0_6, %c0_7] : memref<1x4x4xf32, #tpu.memory_space<vmem>>, vector<1x4x4xf32>
    %9 = vector.shape_cast %8 : vector<1x4x4xf32> to vector<4x4xf32>
    %c0_8 = arith.constant 0 : index
    %c0_9 = arith.constant 0 : index
    %c0_10 = arith.constant 0 : index
    %10 = vector.load %arg5[%c0_8, %c0_9, %c0_10] : memref<1x4x8xf32, #tpu.memory_space<vmem>>, vector<1x4x8xf32>
    %11 = vector.shape_cast %10 : vector<1x4x8xf32> to vector<4x8xf32>
    %12 = vector.extract_strided_slice %11 {offsets = [0, 0], sizes = [4, 1], strides = [1, 1]} : vector<4x8xf32> to vector<4x1xf32>
    %13 = vector.extract_strided_slice %11 {offsets = [0, 1], sizes = [4, 1], strides = [1, 1]} : vector<4x8xf32> to vector<4x1xf32>
    %14 = vector.extract_strided_slice %11 {offsets = [0, 2], sizes = [4, 1], strides = [1, 1]} : vector<4x8xf32> to vector<4x1xf32>
    %15 = vector.extract_strided_slice %11 {offsets = [0, 3], sizes = [4, 1], strides = [1, 1]} : vector<4x8xf32> to vector<4x1xf32>
    %16 = vector.extract_strided_slice %11 {offsets = [0, 4], sizes = [4, 1], strides = [1, 1]} : vector<4x8xf32> to vector<4x1xf32>
    %17 = vector.extract_strided_slice %11 {offsets = [0, 5], sizes = [4, 1], strides = [1, 1]} : vector<4x8xf32> to vector<4x1xf32>
    %18 = vector.extract_strided_slice %11 {offsets = [0, 6], sizes = [4, 1], strides = [1, 1]} : vector<4x8xf32> to vector<4x1xf32>
    %19 = vector.extract_strided_slice %11 {offsets = [0, 7], sizes = [4, 1], strides = [1, 1]} : vector<4x8xf32> to vector<4x1xf32>
    %20 = vector.extract_strided_slice %6 {offsets = [0, 0], sizes = [4, 1], strides = [1, 1]} : vector<4x4xf32> to vector<4x1xf32>
    %21 = vector.extract_strided_slice %3 {offsets = [0, 0], sizes = [1, 512], strides = [1, 1]} : vector<4x512xf32> to vector<1x512xf32>
    %22 = vector.broadcast %20 : vector<4x1xf32> to vector<4x512xf32>
    %23 = vector.broadcast %21 : vector<1x512xf32> to vector<4x512xf32>
    %24 = arith.mulf %22, %23 : vector<4x512xf32>
    %25 = vector.extract_strided_slice %6 {offsets = [0, 1], sizes = [4, 1], strides = [1, 1]} : vector<4x4xf32> to vector<4x1xf32>
    %26 = vector.extract_strided_slice %3 {offsets = [1, 0], sizes = [1, 512], strides = [1, 1]} : vector<4x512xf32> to vector<1x512xf32>
    %27 = vector.broadcast %25 : vector<4x1xf32> to vector<4x512xf32>
    %28 = vector.broadcast %26 : vector<1x512xf32> to vector<4x512xf32>
    %29 = arith.mulf %27, %28 : vector<4x512xf32>
    %30 = arith.addf %24, %29 : vector<4x512xf32>
    %31 = vector.extract_strided_slice %6 {offsets = [0, 2], sizes = [4, 1], strides = [1, 1]} : vector<4x4xf32> to vector<4x1xf32>
    %32 = vector.extract_strided_slice %3 {offsets = [2, 0], sizes = [1, 512], strides = [1, 1]} : vector<4x512xf32> to vector<1x512xf32>
    %33 = vector.broadcast %31 : vector<4x1xf32> to vector<4x512xf32>
    %34 = vector.broadcast %32 : vector<1x512xf32> to vector<4x512xf32>
    %35 = arith.mulf %33, %34 : vector<4x512xf32>
    %36 = arith.addf %30, %35 : vector<4x512xf32>
    %37 = vector.extract_strided_slice %6 {offsets = [0, 3], sizes = [4, 1], strides = [1, 1]} : vector<4x4xf32> to vector<4x1xf32>
    %38 = vector.extract_strided_slice %3 {offsets = [3, 0], sizes = [1, 512], strides = [1, 1]} : vector<4x512xf32> to vector<1x512xf32>
    %39 = vector.broadcast %37 : vector<4x1xf32> to vector<4x512xf32>
    %40 = vector.broadcast %38 : vector<1x512xf32> to vector<4x512xf32>
    %41 = arith.mulf %39, %40 : vector<4x512xf32>
    %42 = arith.addf %36, %41 : vector<4x512xf32>
    %cst = arith.constant dense<0.000000e+00> : vector<4xf32>
    %43 = vector.multi_reduction <add>, %42, %cst [1] : vector<4x512xf32> to vector<4xf32>
    %44 = vector.shape_cast %43 : vector<4xf32> to vector<4x1xf32>
    %cst_11 = arith.constant 0.001953125 : f32
    %45 = vector.broadcast %cst_11 : f32 to vector<4x1xf32>
    %46 = arith.mulf %44, %45 : vector<4x1xf32>
    %47 = vector.broadcast %46 : vector<4x1xf32> to vector<4x512xf32>
    %48 = arith.subf %42, %47 : vector<4x512xf32>
    %49 = arith.mulf %48, %48 : vector<4x512xf32>
    %cst_12 = arith.constant dense<0.000000e+00> : vector<4xf32>
    %50 = vector.multi_reduction <add>, %49, %cst_12 [1] : vector<4x512xf32> to vector<4xf32>
    %51 = vector.shape_cast %50 : vector<4xf32> to vector<4x1xf32>
    %cst_13 = arith.constant 0.001953125 : f32
    %52 = vector.broadcast %cst_13 : f32 to vector<4x1xf32>
    %53 = arith.mulf %51, %52 : vector<4x1xf32>
    %cst_14 = arith.constant 9.99999974E-6 : f32
    %54 = vector.broadcast %cst_14 : f32 to vector<4x1xf32>
    %55 = arith.addf %53, %54 : vector<4x1xf32>
    %56 = math.rsqrt %55 : vector<4x1xf32>
    %57 = arith.mulf %12, %56 : vector<4x1xf32>
    %58 = vector.broadcast %57 : vector<4x1xf32> to vector<4x512xf32>
    %59 = arith.mulf %48, %58 : vector<4x512xf32>
    %60 = vector.broadcast %13 : vector<4x1xf32> to vector<4x512xf32>
    %61 = arith.addf %59, %60 : vector<4x512xf32>
    %cst_15 = arith.constant 0.000000e+00 : f32
    %62 = vector.broadcast %cst_15 : f32 to vector<4x512xf32>
    %63 = arith.cmpf ogt, %61, %62 : vector<4x512xf32>
    %64 = vector.broadcast %14 : vector<4x1xf32> to vector<4x512xf32>
    %65 = arith.mulf %61, %64 : vector<4x512xf32>
    %66 = arith.select %63, %61, %65 : vector<4x512xi1>, vector<4x512xf32>
    %c0_16 = arith.constant 0 : index
    %c0_17 = arith.constant 0 : index
    %67 = vector.load %arg2[%c0_16, %c0_17] : memref<4x512xf32, #tpu.memory_space<vmem>>, vector<1x512xf32>
    %c1 = arith.constant 1 : index
    %c0_18 = arith.constant 0 : index
    %68 = vector.load %arg2[%c1, %c0_18] : memref<4x512xf32, #tpu.memory_space<vmem>>, vector<1x512xf32>
    %c2 = arith.constant 2 : index
    %c0_19 = arith.constant 0 : index
    %69 = vector.load %arg2[%c2, %c0_19] : memref<4x512xf32, #tpu.memory_space<vmem>>, vector<1x512xf32>
    %c3 = arith.constant 3 : index
    %c0_20 = arith.constant 0 : index
    %70 = vector.load %arg2[%c3, %c0_20] : memref<4x512xf32, #tpu.memory_space<vmem>>, vector<1x512xf32>
    %71 = vector.extract_strided_slice %7 {offsets = [0, 4], sizes = [4, 1], strides = [1, 1]} : vector<4x9xf32> to vector<4x1xf32>
    %72 = vector.broadcast %71 : vector<4x1xf32> to vector<4x512xf32>
    %73 = arith.mulf %72, %66 : vector<4x512xf32>
    %74 = arith.mulf %67, %69 : vector<1x512xf32>
    %c17_i32 = arith.constant 17 : i32
    %75 = tpu.dynamic_rotate %66 by %c17_i32 dim 1 : vector<4x512xf32>, i32 -> vector<4x512xf32>
    %76 = vector.extract_strided_slice %7 {offsets = [0, 0], sizes = [4, 1], strides = [1, 1]} : vector<4x9xf32> to vector<4x1xf32>
    %77 = vector.broadcast %74 : vector<1x512xf32> to vector<4x512xf32>
    %78 = arith.mulf %77, %75 : vector<4x512xf32>
    %79 = vector.broadcast %76 : vector<4x1xf32> to vector<4x512xf32>
    %80 = arith.mulf %79, %78 : vector<4x512xf32>
    %81 = arith.addf %73, %80 : vector<4x512xf32>
    %c16_i32 = arith.constant 16 : i32
    %82 = tpu.dynamic_rotate %66 by %c16_i32 dim 1 : vector<4x512xf32>, i32 -> vector<4x512xf32>
    %83 = vector.extract_strided_slice %7 {offsets = [0, 1], sizes = [4, 1], strides = [1, 1]} : vector<4x9xf32> to vector<4x1xf32>
    %84 = vector.broadcast %67 : vector<1x512xf32> to vector<4x512xf32>
    %85 = arith.mulf %84, %82 : vector<4x512xf32>
    %86 = vector.broadcast %83 : vector<4x1xf32> to vector<4x512xf32>
    %87 = arith.mulf %86, %85 : vector<4x512xf32>
    %88 = arith.addf %81, %87 : vector<4x512xf32>
    %89 = arith.mulf %67, %70 : vector<1x512xf32>
    %c15_i32 = arith.constant 15 : i32
    %90 = tpu.dynamic_rotate %66 by %c15_i32 dim 1 : vector<4x512xf32>, i32 -> vector<4x512xf32>
    %91 = vector.extract_strided_slice %7 {offsets = [0, 2], sizes = [4, 1], strides = [1, 1]} : vector<4x9xf32> to vector<4x1xf32>
    %92 = vector.broadcast %89 : vector<1x512xf32> to vector<4x512xf32>
    %93 = arith.mulf %92, %90 : vector<4x512xf32>
    %94 = vector.broadcast %91 : vector<4x1xf32> to vector<4x512xf32>
    %95 = arith.mulf %94, %93 : vector<4x512xf32>
    %96 = arith.addf %88, %95 : vector<4x512xf32>
    %c1_i32 = arith.constant 1 : i32
    %97 = tpu.dynamic_rotate %66 by %c1_i32 dim 1 : vector<4x512xf32>, i32 -> vector<4x512xf32>
    %98 = vector.extract_strided_slice %7 {offsets = [0, 3], sizes = [4, 1], strides = [1, 1]} : vector<4x9xf32> to vector<4x1xf32>
    %99 = vector.broadcast %69 : vector<1x512xf32> to vector<4x512xf32>
    %100 = arith.mulf %99, %97 : vector<4x512xf32>
    %101 = vector.broadcast %98 : vector<4x1xf32> to vector<4x512xf32>
    %102 = arith.mulf %101, %100 : vector<4x512xf32>
    %103 = arith.addf %96, %102 : vector<4x512xf32>
    %c511_i32 = arith.constant 511 : i32
    %104 = tpu.dynamic_rotate %66 by %c511_i32 dim 1 : vector<4x512xf32>, i32 -> vector<4x512xf32>
    %105 = vector.extract_strided_slice %7 {offsets = [0, 5], sizes = [4, 1], strides = [1, 1]} : vector<4x9xf32> to vector<4x1xf32>
    %106 = vector.broadcast %70 : vector<1x512xf32> to vector<4x512xf32>
    %107 = arith.mulf %106, %104 : vector<4x512xf32>
    %108 = vector.broadcast %105 : vector<4x1xf32> to vector<4x512xf32>
    %109 = arith.mulf %108, %107 : vector<4x512xf32>
    %110 = arith.addf %103, %109 : vector<4x512xf32>
    %111 = arith.mulf %68, %69 : vector<1x512xf32>
    %c497_i32 = arith.constant 497 : i32
    %112 = tpu.dynamic_rotate %66 by %c497_i32 dim 1 : vector<4x512xf32>, i32 -> vector<4x512xf32>
    %113 = vector.extract_strided_slice %7 {offsets = [0, 6], sizes = [4, 1], strides = [1, 1]} : vector<4x9xf32> to vector<4x1xf32>
    %114 = vector.broadcast %111 : vector<1x512xf32> to vector<4x512xf32>
    %115 = arith.mulf %114, %112 : vector<4x512xf32>
    %116 = vector.broadcast %113 : vector<4x1xf32> to vector<4x512xf32>
    %117 = arith.mulf %116, %115 : vector<4x512xf32>
    %118 = arith.addf %110, %117 : vector<4x512xf32>
    %c496_i32 = arith.constant 496 : i32
    %119 = tpu.dynamic_rotate %66 by %c496_i32 dim 1 : vector<4x512xf32>, i32 -> vector<4x512xf32>
    %120 = vector.extract_strided_slice %7 {offsets = [0, 7], sizes = [4, 1], strides = [1, 1]} : vector<4x9xf32> to vector<4x1xf32>
    %121 = vector.broadcast %68 : vector<1x512xf32> to vector<4x512xf32>
    %122 = arith.mulf %121, %119 : vector<4x512xf32>
    %123 = vector.broadcast %120 : vector<4x1xf32> to vector<4x512xf32>
    %124 = arith.mulf %123, %122 : vector<4x512xf32>
    %125 = arith.addf %118, %124 : vector<4x512xf32>
    %126 = arith.mulf %68, %70 : vector<1x512xf32>
    %c495_i32 = arith.constant 495 : i32
    %127 = tpu.dynamic_rotate %66 by %c495_i32 dim 1 : vector<4x512xf32>, i32 -> vector<4x512xf32>
    %128 = vector.extract_strided_slice %7 {offsets = [0, 8], sizes = [4, 1], strides = [1, 1]} : vector<4x9xf32> to vector<4x1xf32>
    %129 = vector.broadcast %126 : vector<1x512xf32> to vector<4x512xf32>
    %130 = arith.mulf %129, %127 : vector<4x512xf32>
    %131 = vector.broadcast %128 : vector<4x1xf32> to vector<4x512xf32>
    %132 = arith.mulf %131, %130 : vector<4x512xf32>
    %133 = arith.addf %125, %132 : vector<4x512xf32>
    %cst_21 = arith.constant dense<0.000000e+00> : vector<4xf32>
    %134 = vector.multi_reduction <add>, %133, %cst_21 [1] : vector<4x512xf32> to vector<4xf32>
    %135 = vector.shape_cast %134 : vector<4xf32> to vector<4x1xf32>
    %cst_22 = arith.constant 0.001953125 : f32
    %136 = vector.broadcast %cst_22 : f32 to vector<4x1xf32>
    %137 = arith.mulf %135, %136 : vector<4x1xf32>
    %138 = vector.broadcast %137 : vector<4x1xf32> to vector<4x512xf32>
    %139 = arith.subf %133, %138 : vector<4x512xf32>
    %140 = arith.mulf %139, %139 : vector<4x512xf32>
    %cst_23 = arith.constant dense<0.000000e+00> : vector<4xf32>
    %141 = vector.multi_reduction <add>, %140, %cst_23 [1] : vector<4x512xf32> to vector<4xf32>
    %142 = vector.shape_cast %141 : vector<4xf32> to vector<4x1xf32>
    %cst_24 = arith.constant 0.001953125 : f32
    %143 = vector.broadcast %cst_24 : f32 to vector<4x1xf32>
    %144 = arith.mulf %142, %143 : vector<4x1xf32>
    %cst_25 = arith.constant 9.99999974E-6 : f32
    %145 = vector.broadcast %cst_25 : f32 to vector<4x1xf32>
    %146 = arith.addf %144, %145 : vector<4x1xf32>
    %147 = math.rsqrt %146 : vector<4x1xf32>
    %148 = arith.mulf %15, %147 : vector<4x1xf32>
    %149 = vector.broadcast %148 : vector<4x1xf32> to vector<4x512xf32>
    %150 = arith.mulf %139, %149 : vector<4x512xf32>
    %151 = vector.broadcast %16 : vector<4x1xf32> to vector<4x512xf32>
    %152 = arith.addf %150, %151 : vector<4x512xf32>
    %cst_26 = arith.constant 0.000000e+00 : f32
    %153 = vector.broadcast %cst_26 : f32 to vector<4x512xf32>
    %154 = arith.cmpf ogt, %152, %153 : vector<4x512xf32>
    %155 = vector.broadcast %17 : vector<4x1xf32> to vector<4x512xf32>
    %156 = arith.mulf %152, %155 : vector<4x512xf32>
    %157 = arith.select %154, %152, %156 : vector<4x512xi1>, vector<4x512xf32>
    %158 = vector.extract_strided_slice %9 {offsets = [0, 0], sizes = [4, 1], strides = [1, 1]} : vector<4x4xf32> to vector<4x1xf32>
    %159 = vector.extract_strided_slice %157 {offsets = [0, 0], sizes = [1, 512], strides = [1, 1]} : vector<4x512xf32> to vector<1x512xf32>
    %160 = vector.broadcast %158 : vector<4x1xf32> to vector<4x512xf32>
    %161 = vector.broadcast %159 : vector<1x512xf32> to vector<4x512xf32>
    %162 = arith.mulf %160, %161 : vector<4x512xf32>
    %163 = vector.extract_strided_slice %9 {offsets = [0, 1], sizes = [4, 1], strides = [1, 1]} : vector<4x4xf32> to vector<4x1xf32>
    %164 = vector.extract_strided_slice %157 {offsets = [1, 0], sizes = [1, 512], strides = [1, 1]} : vector<4x512xf32> to vector<1x512xf32>
    %165 = vector.broadcast %163 : vector<4x1xf32> to vector<4x512xf32>
    %166 = vector.broadcast %164 : vector<1x512xf32> to vector<4x512xf32>
    %167 = arith.mulf %165, %166 : vector<4x512xf32>
    %168 = arith.addf %162, %167 : vector<4x512xf32>
    %169 = vector.extract_strided_slice %9 {offsets = [0, 2], sizes = [4, 1], strides = [1, 1]} : vector<4x4xf32> to vector<4x1xf32>
    %170 = vector.extract_strided_slice %157 {offsets = [2, 0], sizes = [1, 512], strides = [1, 1]} : vector<4x512xf32> to vector<1x512xf32>
    %171 = vector.broadcast %169 : vector<4x1xf32> to vector<4x512xf32>
    %172 = vector.broadcast %170 : vector<1x512xf32> to vector<4x512xf32>
    %173 = arith.mulf %171, %172 : vector<4x512xf32>
    %174 = arith.addf %168, %173 : vector<4x512xf32>
    %175 = vector.extract_strided_slice %9 {offsets = [0, 3], sizes = [4, 1], strides = [1, 1]} : vector<4x4xf32> to vector<4x1xf32>
    %176 = vector.extract_strided_slice %157 {offsets = [3, 0], sizes = [1, 512], strides = [1, 1]} : vector<4x512xf32> to vector<1x512xf32>
    %177 = vector.broadcast %175 : vector<4x1xf32> to vector<4x512xf32>
    %178 = vector.broadcast %176 : vector<1x512xf32> to vector<4x512xf32>
    %179 = arith.mulf %177, %178 : vector<4x512xf32>
    %180 = arith.addf %174, %179 : vector<4x512xf32>
    %cst_27 = arith.constant dense<0.000000e+00> : vector<4xf32>
    %181 = vector.multi_reduction <add>, %180, %cst_27 [1] : vector<4x512xf32> to vector<4xf32>
    %182 = vector.shape_cast %181 : vector<4xf32> to vector<4x1xf32>
    %cst_28 = arith.constant 0.001953125 : f32
    %183 = vector.broadcast %cst_28 : f32 to vector<4x1xf32>
    %184 = arith.mulf %182, %183 : vector<4x1xf32>
    %185 = vector.broadcast %184 : vector<4x1xf32> to vector<4x512xf32>
    %186 = arith.subf %180, %185 : vector<4x512xf32>
    %187 = arith.mulf %186, %186 : vector<4x512xf32>
    %cst_29 = arith.constant dense<0.000000e+00> : vector<4xf32>
    %188 = vector.multi_reduction <add>, %187, %cst_29 [1] : vector<4x512xf32> to vector<4xf32>
    %189 = vector.shape_cast %188 : vector<4xf32> to vector<4x1xf32>
    %cst_30 = arith.constant 0.001953125 : f32
    %190 = vector.broadcast %cst_30 : f32 to vector<4x1xf32>
    %191 = arith.mulf %189, %190 : vector<4x1xf32>
    %cst_31 = arith.constant 9.99999974E-6 : f32
    %192 = vector.broadcast %cst_31 : f32 to vector<4x1xf32>
    %193 = arith.addf %191, %192 : vector<4x1xf32>
    %194 = math.rsqrt %193 : vector<4x1xf32>
    %195 = arith.mulf %18, %194 : vector<4x1xf32>
    %196 = vector.broadcast %195 : vector<4x1xf32> to vector<4x512xf32>
    %197 = arith.mulf %186, %196 : vector<4x512xf32>
    %198 = vector.broadcast %19 : vector<4x1xf32> to vector<4x512xf32>
    %199 = arith.addf %197, %198 : vector<4x512xf32>
    %200 = arith.addf %3, %199 : vector<4x512xf32>
    %c0_32 = arith.constant 0 : index
    %c0_33 = arith.constant 0 : index
    %201 = vector.load %arg6[%c0_32, %c0_33] : memref<4x512xf32, #tpu.memory_space<vmem>>, vector<4x512xf32>
    tpu.vector_store %arg6[%c0_32, %c0_33], %200 {strides = array<i32>} : memref<4x512xf32, #tpu.memory_space<vmem>>, vector<4x512xf32>,
    return
  }
  func.func @transform_0(%arg0: i32) -> (i32, i32) {
    %c0_i32 = arith.constant 0 : i32
    %c0_i32_0 = arith.constant 0 : i32
    %c0_i32_1 = arith.constant 0 : i32
    return %c0_i32, %c0_i32_0 : i32, i32
  }
  func.func @transform_1(%arg0: i32) -> (i32, i32) {
    %c0_i32 = arith.constant 0 : i32
    %c0_i32_0 = arith.constant 0 : i32
    %c0_i32_1 = arith.constant 0 : i32
    return %c0_i32, %c0_i32_0 : i32, i32
  }
  func.func @transform_2(%arg0: i32) -> (i32, i32, i32) {
    %c0_i32 = arith.constant 0 : i32
    %c0_i32_0 = arith.constant 0 : i32
    %c0_i32_1 = arith.constant 0 : i32
    return %arg0, %c0_i32, %c0_i32_0 : i32, i32, i32
  }
  func.func @transform_3(%arg0: i32) -> (i32, i32, i32) {
    %c0_i32 = arith.constant 0 : i32
    %c0_i32_0 = arith.constant 0 : i32
    %c0_i32_1 = arith.constant 0 : i32
    return %arg0, %c0_i32, %c0_i32_0 : i32, i32, i32
  }
  func.func @transform_4(%arg0: i32) -> (i32, i32, i32) {
    %c0_i32 = arith.constant 0 : i32
    %c0_i32_0 = arith.constant 0 : i32
    %c0_i32_1 = arith.constant 0 : i32
    return %arg0, %c0_i32, %c0_i32_0 : i32, i32, i32
  }
  func.func @transform_5(%arg0: i32) -> (i32, i32) {
    %c0_i32 = arith.constant 0 : i32
    %c0_i32_0 = arith.constant 0 : i32
    %c0_i32_1 = arith.constant 0 : i32
    return %c0_i32, %c0_i32_0 : i32, i32
  }
}

</mosaic_0001>

<bundles_post_ra>
// kernel: multi_depthwise_res.1
= control target key start
LH: loop header
LB: loop body
LE: loop exit
PB: predicated region body
PF: predicated region fallthrough
CT: control target
= control target key end

     0   :  { %s1352_s18 = smov 0   ;;  %s1829_s0 = inlined_call_operand.vmem [shape: f32[4,512], index: 0, kind: input, shape index: {}, may-alias: {0,5}]   ;;  %s1830_s1 = inlined_call_operand.vmem [shape: f32[4,512], index: 1, kind: input, shape index: {}]   ;;  %s1831_s2 = inlined_call_operand.vmem [shape: f32[2,4,13], index: 2, kind: input, shape index: {}]   ;;  %s1832_s3 = inlined_call_operand.vmem [shape: f32[2,4,4], index: 3, kind: input, shape index: {}]   ;;  %s1833_s4 = inlined_call_operand.vmem [shape: f32[2,4,8], index: 4, kind: input, shape index: {}]   ;;  %s1834_s5 = inlined_call_operand.vmem [shape: f32[4,512], index: 5, kind: output, shape index: {}, may-alias: {0,5}]  }
   0x1 LB: > { %s1217_s19 = sadd.s32 4294967295, %s1299_s18   ;;  %p1220_p0 = scmp.ge.s32.totalorder %s1299_s18, 1  ;;  %s1299_s18 = sphi %s1352_s18, %s15_s18  }
   0x2   : > { %p199_p1 = scmp.lt.s32.totalorder %s1299_s18, 3 }
   0x4   : > { %p200_p2 = pnand %p1220_p0, %p199_p1 }
   0x5   : > { %p229_p3 = scmp.lt.s32.totalorder (!%p200_p2), %s1217_s19, 1  ;;  %p1224_p4 = scmp.ne.s32.totalorder (!%p200_p2), %s1217_s19, 0 }
   0x6   : > { %203 = sbr.rel (%p200_p2) target bundleno = 1758 (0x6de), region = 40 }
   0xd   : > { %s230_s20 = scalar_select %p229_p3, %s1217_s19, 1 }
   0xe   : > { %244 = sbr.rel (%p1224_p4) target bundleno = 21 (0x15), region = 44  ;;  %v245_v0 = vld [vmem:[%s1829_s0] sm:$0xff] (!%p1224_p4)  ;;  %v246_v1 = vld [vmem:[%s1829_s0 + $0x8] sm:$0xff] (!%p1224_p4) }
   0xf   : > { %s1360_s21 = sshll.u32 %s230_s20, 2  ;;  %247 = vst [vmem:[%s1834_s5] sm:$0xff] (!%p1224_p4), %v245_v0  ;;  %248 = vst [vmem:[%s1834_s5 + $0x8] sm:$0xff] (!%p1224_p4), %v246_v1 }
  0x10   : > { %s232_s24 = scalar_lea.vmem %s1831_s2, %s1360_s21  ;;  %s236_s27 = scalar_lea.vmem %s1832_s3, %s1360_s21 }
  0x11   : > { %s240_s30 = scalar_lea.vmem %s1833_s4, %s1360_s21 }
  0x15 PF: > { %v1386_v2 = vld [vmem:[%s232_s24] sm:$0xf]  ;;  %v1301_v3 = vmov 0   ;;  %v1839_v4 = vmov 2   ;;  %v1840_v5 = vmov 1   ;;  %v1838_v6 = vmov 3  }
  0x16   : > { %1259 = vset.pattern.permute.xlu0 %v1301_v3  ;;  %1261 = vset.pattern.permute.xlu1 %v1839_v4  ;;  %v261_v7 = vlaneseq  ;;  %v249_v12 = vld [vmem:[%s1834_s5] sm:$0xff]  ;;  %v250_v13 = vld [vmem:[%s1834_s5 + $0x8] sm:$0xff]  ;;  %vm445_vm0 = vcmask 1043456   ;;  %s1314_s22 = smov 16   ;;  %s1315_s23 = smov 17  }
  0x17   : > { %256 = vperm.xlu0 %1259, %v1386_v2   ;;  %350 = vperm.xlu1 %1261, %v1386_v2   ;;  %s1316_s24 = smov 15   ;;  %s1317_s25 = smov 1  }
  0x18   : > { %v262_v8 = vshrl.u32 %v261_v7, 7  ;;  %s1318_s26 = smov 127   ;;  %s1319_s28 = smov 113  }
  0x19   : > { %s1320_s29 = smov 112  }
  0x1a   : > { %v1399_v9 = vsub.s32 0, %v262_v8  ;;  %v267_v10 = vsub.s32 4, %v262_v8  ;;  %v1401_v11 = vsub.s32 2, %v262_v8  ;;  %v359_v14 = vsub.s32 6, %v262_v8 }
  0x1b   : > { %1260 = vset.pattern.permute.xlu0 %v1840_v5  ;;  %1262 = vset.pattern.permute.xlu1 %v1838_v6  ;;  %v1409_v15 = vsub.s32 1, %v262_v8  ;;  %v311_v16 = vsub.s32 5, %v262_v8  ;;  %v1411_v17 = vsub.s32 3, %v262_v8  ;;  %v407_v18 = vsub.s32 7, %v262_v8 }
  0x1c   : > { %302 = vperm.xlu0 %1260, %v1386_v2   ;;  %398 = vperm.xlu1 %1262, %v1386_v2   ;;  %v264_v19 = vrot.slane %v249_v12, %v1399_v9  ;;  %v268_v20 = vrot.slane %v249_v12, %v267_v10  ;;  %v272_v21 = vrot.slane %v250_v13, %v1399_v9 }
  0x1d   : > { %v276_v22 = vrot.slane %v250_v13, %v267_v10  ;;  %v356_v23 = vrot.slane %v249_v12, %v1401_v11  ;;  %v360_v24 = vrot.slane %v249_v12, %v359_v14  ;;  %v364_v25 = vrot.slane %v250_v13, %v1401_v11 }
  0x1e   : > { %v308_v26 = vrot.slane %v249_v12, %v1409_v15  ;;  %v312_v27 = vrot.slane %v249_v12, %v311_v16  ;;  %v316_v28 = vrot.slane %v250_v13, %v1409_v15  ;;  %v320_v29 = vrot.slane %v250_v13, %v311_v16 }
  0x1f   : > { %v368_v30 = vrot.slane %v250_v13, %v359_v14  ;;  %v404_v31 = vrot.slane %v249_v12, %v1411_v17  ;;  %v408_v32 = vrot.slane %v249_v12, %v407_v18  ;;  %v412_v33 = vrot.slane %v250_v13, %v1411_v17 }
  0x20   : > { %1263 = vset.pattern.permute.xlu1 %v1840_v5  ;;  %1268 = vset.pattern.permute.xlu0 %v1301_v3  ;;  %v284_v35 = vrot.slane %v264_v19, %v1399_v9  ;;  %v288_v36 = vrot.slane %v268_v20, %v1399_v9  ;;  %v292_v37 = vrot.slane %v272_v21, %v1399_v9 }
  0x21   : > { %v416_v39 = vrot.slane %v250_v13, %v407_v18  ;;  %v296_v40 = vrot.slane %v276_v22, %v1399_v9  ;;  %v376_v41 = vrot.slane %v356_v23, %v1401_v11  ;;  %v380_v42 = vrot.slane %v360_v24, %v1401_v11 }
  0x22   : > { %v384_v43 = vrot.slane %v364_v25, %v1401_v11  ;;  %v328_v44 = vrot.slane %v308_v26, %v1409_v15  ;;  %v332_v45 = vrot.slane %v312_v27, %v1409_v15  ;;  %v336_v46 = vrot.slane %v316_v28, %v1409_v15 }
  0x23   : > { %v340_v47 = vrot.slane %v320_v29, %v1409_v15  ;;  %v388_v48 = vrot.slane %v368_v30, %v1401_v11  ;;  %v424_v49 = vrot.slane %v404_v31, %v1411_v17  ;;  %v428_v50 = vrot.slane %v408_v32, %v1411_v17 }
  0x24   : > { %v432_v51 = vrot.slane %v412_v33, %v1411_v17  ;;  %v436_v55 = vrot.slane %v416_v39, %v1411_v17 }
  0x96   : > { %v257_v34 = vpop.permute.xlu0 %256  ;;  %v351_v38 = vpop.permute.xlu1 %350 }
  0x97   : > { %v297_v52 = vmul.f32 %v284_v35, %v257_v34  ;;  %v298_v53 = vmul.f32 %v288_v36, %v257_v34  ;;  %v299_v54 = vmul.f32 %v292_v37, %v257_v34  ;;  %v300_v56 = vmul.f32 %v296_v40, %v257_v34 }
  0x98   : > { %v389_v57 = vmul.f32 %v376_v41, %v351_v38  ;;  %v390_v58 = vmul.f32 %v380_v42, %v351_v38  ;;  %v391_v59 = vmul.f32 %v384_v43, %v351_v38  ;;  %v392_v8 = vmul.f32 %v388_v48, %v351_v38 }
  0x9b   : > { %v303_v60 = vpop.permute.xlu0 %302  ;;  %v399_v61 = vpop.permute.xlu1 %398 }
  0x9c   : > { %v341_v62 = vmul.f32 %v328_v44, %v303_v60  ;;  %v342_v63 = vmul.f32 %v332_v45, %v303_v60  ;;  %v343_v0 = vmul.f32 %v336_v46, %v303_v60  ;;  %v344_v1 = vmul.f32 %v340_v47, %v303_v60 }
  0x9d   : > { %v437_v10 = vmul.f32 %v424_v49, %v399_v61  ;;  %v438_v12 = vmul.f32 %v428_v50, %v399_v61  ;;  %v439_v13 = vmul.f32 %v432_v51, %v399_v61  ;;  %v440_v20 = vmul.f32 %v436_v55, %v399_v61 }
  0x9e   : > { %v345_v14 = vadd.f32 %v341_v62, %v297_v52  ;;  %v346_v16 = vadd.f32 %v342_v63, %v298_v53  ;;  %v347_v18 = vadd.f32 %v343_v0, %v299_v54  ;;  %v348_v19 = vadd.f32 %v344_v1, %v300_v56  ;;  %v1454_v53 = vld [vmem:[%s240_s30] sm:$0xf]  ;;  %s1321_s30 = smov 111  }
  0x9f   : > { %v1305_v54 = vmov 8   ;;  %v1306_v55 = vmov 4   ;;  %v1307_v56 = vmov 5   ;;  %v1835_v62 = vmov 6  }
  0xa0   : > { %v393_v21 = vadd.f32 %v389_v57, %v345_v14  ;;  %v394_v22 = vadd.f32 %v390_v58, %v346_v16  ;;  %v395_v23 = vadd.f32 %v391_v59, %v347_v18  ;;  %v396_v24 = vadd.f32 %v392_v8, %v348_v19 }
  0xa1   : > { %v1836_v63 = vmov 7   ;;  %v1310_v0 = vmov 9   ;;  %v1311_v1 = vmov 10   ;;  %v1312_v8 = vmov 11  }
  0xa2   : > { %v441_v25 = vadd.f32 %v437_v10, %v393_v21  ;;  %v442_v26 = vadd.f32 %v438_v12, %v394_v22  ;;  %v443_v27 = vadd.f32 %v439_v13, %v395_v23  ;;  %v444_v28 = vadd.f32 %v440_v20, %v396_v24 }
  0xa3   : > { %v1313_v10 = vmov 12  }
  0xa4   : > { %v446_v29 = vsel %vm445_vm0, %v441_v25, 0.0  ;;  %v447_v30 = vsel %vm445_vm0, %v442_v26, 0.0  ;;  %v449_v32 = vsel %vm445_vm0, %v443_v27, 0.0  ;;  %v451_v34 = vsel %vm445_vm0, %v444_v28, 0.0 }
  0xa5   : > { %v448_v31 = vadd.f32 %v447_v30, %v446_v29 }
  0xa7   : > { %v450_v33 = vadd.f32 %v449_v32, %v448_v31 }
  0xa9   : > { %v452_v35 = vadd.f32 %v451_v34, %v450_v33 }
  0xab   : > { %453 = vadd.xlane.f32.xlu1 %v452_v35 }
  0xbc   : > { %488 = vperm.xlu1 %1263, %v1454_v53  }
  0xc0   : > { %1264 = vset.pattern.permute.xlu1 %v1839_v4 }
  0xc1   : > { %500 = vperm.xlu1 %1264, %v1454_v53  }
  0xc5   : > { %1265 = vset.pattern.permute.xlu1 %v1305_v54 }
  0xc6   : > { %519 = vperm.xlu1 %1265, %v1386_v2  }
  0xca   : > { %1266 = vset.pattern.permute.xlu1 %v1306_v55 }
  0xcb   : > { %568 = vperm.xlu1 %1266, %v1386_v2  }
  0xcf   : > { %1267 = vset.pattern.permute.xlu1 %v1307_v56 }
  0xd0   : > { %618 = vperm.xlu1 %1267, %v1386_v2  }
  0xd4   : > { %1276 = vset.pattern.permute.xlu1 %v1306_v55 }
 0x138   : > { %v454_v36 = vpop.xlane.xlu1 %453 }
 0x139   : > { %v455_v37 = vmul.f32 0.001953125, %v454_v36 }
 0x13b   : > { %v456_v38 = vsub.f32 %v441_v25, %v455_v37  ;;  %v457_v39 = vsub.f32 %v442_v26, %v455_v37  ;;  %v1441_v40 = vsub.f32 %v443_v27, %v455_v37  ;;  %v459_v41 = vsub.f32 %v444_v28, %v455_v37 }
 0x13c   : > { %v489_v12 = vpop.permute.xlu1 %488 }
 0x13d   : > { %v460_v42 = vmul.f32 %v456_v38, %v456_v38  ;;  %v461_v43 = vmul.f32 %v457_v39, %v457_v39  ;;  %v462_v44 = vmul.f32 %v1441_v40, %v1441_v40  ;;  %v463_v45 = vmul.f32 %v459_v41, %v459_v41 }
 0x13f   : > { %v464_v46 = vsel %vm445_vm0, %v460_v42, 0.0  ;;  %v465_v47 = vsel %vm445_vm0, %v461_v43, 0.0  ;;  %v467_v49 = vsel %vm445_vm0, %v462_v44, 0.0  ;;  %v469_v51 = vsel %vm445_vm0, %v463_v45, 0.0 }
 0x140   : > { %v466_v48 = vadd.f32 %v465_v47, %v464_v46  ;;  %v501_v14 = vpop.permute.xlu1 %500  ;;  %v1530_v43 = vand.u32 127, %v261_v7 }
 0x142   : > { %v468_v50 = vadd.f32 %v467_v49, %v466_v48  ;;  %vm537_vm5 = vcmp.lt.s32.totalorder %v1530_v43, 17  ;;  %vm587_vm6 = vcmp.lt.s32.totalorder %v1530_v43, 16  ;;  %vm638_vm7 = vcmp.lt.s32.totalorder %v1530_v43, 15 }
 0x143   : > { %vm688_vm8 = vcmp.lt.s32.totalorder %v1530_v43, 1  ;;  %vm738_vm9 = vcmp.lt.s32.totalorder %v1530_v43, 127  ;;  %vm789_vm10 = vcmp.lt.s32.totalorder %v1530_v43, 113  ;;  %vm839_vm11 = vcmp.lt.s32.totalorder %v1530_v43, 112 }
 0x144   : > { %v470_v52 = vadd.f32 %v469_v51, %v468_v50  ;;  %vm890_vm12 = vcmp.lt.s32.totalorder %v1530_v43, 111 }
 0x145   : > { %v1473_v24 = vpop.permute.xlu1 %519 }
 0x146   : > { %471 = vadd.xlane.f32.xlu0 %v470_v52 }
 0x14a   : > { %v569_v36 = vpop.permute.xlu1 %568 }
 0x1d3   : > { %v472_v57 = vpop.xlane.xlu0 %471 }
 0x1d4   : > { %v473_v58 = vmul.f32 0.001953125, %v472_v57 }
 0x1d6   : > { %v474_v59 = vadd.f32 1e-05, %v473_v58 }
 0x1d8   : > { %1285 = vrsqrt.f32 %v474_v59 }
 0x1e2   : > { %v1286_v60 = vpop.eup %1285 }
 0x1e3   : > { %v476_v61 = vmul.f32 %v1286_v60, %v1454_v53 }
 0x1e5   : > { %479 = vperm.xlu0 %1268, %v476_v61  }
 0x1e9   : > { %1269 = vset.pattern.permute.xlu0 %v1835_v62 }
 0x1ea   : > { %669 = vperm.xlu0 %1269, %v1386_v2  }
 0x1ee   : > { %1270 = vset.pattern.permute.xlu0 %v1836_v63 }
 0x1ef   : > { %719 = vperm.xlu0 %1270, %v1386_v2  }
 0x1f3   : > { %1271 = vset.pattern.permute.xlu0 %v1310_v0 }
 0x1f4   : > { %769 = vperm.xlu0 %1271, %v1386_v2  }
 0x1f8   : > { %1272 = vset.pattern.permute.xlu0 %v1311_v1 }
 0x1f9   : > { %820 = vperm.xlu0 %1272, %v1386_v2  }
 0x1fd   : > { %1273 = vset.pattern.permute.xlu0 %v1312_v8 }
 0x1fe   : > { %870 = vperm.xlu0 %1273, %v1386_v2  }
 0x202   : > { %1274 = vset.pattern.permute.xlu0 %v1313_v10 }
 0x203   : > { %921 = vperm.xlu0 %1274, %v1386_v2  }
 0x207   : > { %1275 = vset.pattern.permute.xlu0 %v1838_v6 }
 0x264   : > { %v480_v13 = vpop.permute.xlu0 %479 }
 0x265   : > { %v482_v16 = vmul.f32 %v480_v13, %v456_v38  ;;  %v483_v18 = vmul.f32 %v480_v13, %v457_v39  ;;  %v485_v21 = vmul.f32 %v480_v13, %v459_v41  ;;  %v484_v2 = vmul.f32 %v480_v13, %v1441_v40  ;;  %v619_v38 = vpop.permute.xlu1 %618  ;;  %v1518_v39 = vld [vmem:[%s1830_s1] ss:$4 sm:$0xf]  ;;  %v1523_v40 = vld [vmem:[%s1830_s1 + $0x2] ss:$4 sm:$0xf] }
 0x266   : > { %v526_v42 = vmul.f32 %v1523_v40, %v1518_v39 }
 0x267   : > { %v491_v19 = vadd.f32 %v489_v12, %v482_v16  ;;  %v492_v20 = vadd.f32 %v489_v12, %v483_v18  ;;  %v494_v27 = vadd.f32 %v489_v12, %v485_v21  ;;  %v493_v29 = vadd.f32 %v489_v12, %v484_v2 }
 0x268   : > { %v550_v45 = vrot.slane %v526_v42, %v1409_v15  ;;  %v546_v50 = vrot.slane %v526_v42, %v1399_v9  ;;  %v554_v58 = vrot.slane %v526_v42, %v1401_v11  ;;  %v558_v59 = vrot.slane %v526_v42, %v1411_v17 }
 0x269   : > { %vm495_vm1 = vcmp.gt.f32.partialorder %v491_v19, 0.0  ;;  %vm496_vm2 = vcmp.gt.f32.partialorder %v492_v20, 0.0  ;;  %v503_v22 = vmul.f32 %v501_v14, %v491_v19  ;;  %v504_v23 = vmul.f32 %v501_v14, %v492_v20  ;;  %v1509_v34 = vpop.permute.xlu0 %669 }
 0x26a   : > { %v506_v30 = vmul.f32 %v501_v14, %v494_v27  ;;  %vm498_vm3 = vcmp.gt.f32.partialorder %v494_v27, 0.0  ;;  %v505_v31 = vmul.f32 %v501_v14, %v493_v29  ;;  %vm497_vm4 = vcmp.gt.f32.partialorder %v493_v29, 0.0 }
 0x26b   : > { %v1475_v25 = vsel %vm495_vm1, %v491_v19, %v503_v22  ;;  %v508_v26 = vsel %vm496_vm2, %v492_v20, %v504_v23  ;;  %v600_v14 = vrot.slane %v1518_v39, %v1409_v15 }
 0x26c   : > { %v1479_v28 = vmul.f32 %v1473_v24, %v508_v26  ;;  %581 = vrot.lane.b32.xlu0 %v508_v26, %s1314_s22  ;;  %527 = vrot.lane.b32.xlu1 %v1475_v25, %s1315_s23  ;;  %v1482_v32 = vsel %vm498_vm3, %v494_v27, %v506_v30  ;;  %v1485_v33 = vsel %vm497_vm4, %v493_v29, %v505_v31 }
 0x26d   : > { %v522_v60 = vmul.f32 %v1473_v24, %v1475_v25  ;;  %v524_v16 = vmul.f32 %v1473_v24, %v1485_v33  ;;  %v525_v18 = vmul.f32 %v1473_v24, %v1482_v32  ;;  %v596_v27 = vrot.slane %v1518_v39, %v1399_v9 }
 0x26e   : > { %v1511_v35 = vpop.permute.xlu0 %719 }
 0x270   : > { %632 = vrot.lane.b32.xlu0 %v508_v26, %s1316_s24  ;;  %529 = vrot.lane.b32.xlu1 %v508_v26, %s1315_s23 }
 0x273   : > { %v1513_v37 = vpop.permute.xlu0 %769 }
 0x274   : > { %682 = vrot.lane.b32.xlu0 %v508_v26, %s1317_s25  ;;  %533 = vrot.lane.b32.xlu1 %v1482_v32, %s1315_s23 }
 0x278   : > { %732 = vrot.lane.b32.xlu0 %v508_v26, %s1318_s26  ;;  %531 = vrot.lane.b32.xlu1 %v1485_v33, %s1315_s23  ;;  %v1525_v41 = vpop.permute.xlu0 %820 }
 0x27c   : > { %783 = vrot.lane.b32.xlu0 %v508_v26, %s1319_s28  ;;  %579 = vrot.lane.b32.xlu1 %v1475_v25, %s1314_s22 }
 0x27d   : > { %v1534_v46 = vpop.permute.xlu0 %870 }
 0x280   : > { %833 = vrot.lane.b32.xlu0 %v508_v26, %s1320_s29  ;;  %585 = vrot.lane.b32.xlu1 %v1482_v32, %s1314_s22 }
 0x282   : > { %v1541_v54 = vpop.permute.xlu0 %921 }
 0x284   : > { %837 = vrot.lane.b32.xlu0 %v1482_v32, %s1320_s29  ;;  %583 = vrot.lane.b32.xlu1 %v1485_v33, %s1314_s22 }
 0x288   : > { %884 = vrot.lane.b32.xlu0 %v508_v26, %s1321_s30  ;;  %630 = vrot.lane.b32.xlu1 %v1475_v25, %s1316_s24 }
 0x28c   : > { %888 = vrot.lane.b32.xlu0 %v1482_v32, %s1321_s30  ;;  %636 = vrot.lane.b32.xlu1 %v1482_v32, %s1316_s24 }
 0x290   : > { %634 = vrot.lane.b32.xlu1 %v1485_v33, %s1316_s24 }
 0x294   : > { %680 = vrot.lane.b32.xlu1 %v1475_v25, %s1317_s25 }
 0x298   : > { %686 = vrot.lane.b32.xlu1 %v1482_v32, %s1317_s25 }
 0x29c   : > { %684 = vrot.lane.b32.xlu1 %v1485_v33, %s1317_s25 }
 0x2a0   : > { %730 = vrot.lane.b32.xlu1 %v1475_v25, %s1318_s26 }
 0x2a4   : > { %734 = vrot.lane.b32.xlu1 %v1485_v33, %s1318_s26 }
 0x2a8   : > { %736 = vrot.lane.b32.xlu1 %v1482_v32, %s1318_s26 }
 0x2ac   : > { %781 = vrot.lane.b32.xlu1 %v1475_v25, %s1319_s28 }
 0x2b0   : > { %785 = vrot.lane.b32.xlu1 %v1485_v33, %s1319_s28 }
 0x2b4   : > { %787 = vrot.lane.b32.xlu1 %v1482_v32, %s1319_s28  ;;  %v604_v32 = vrot.slane %v1518_v39, %v1401_v11 }
 0x2b8   : > { %831 = vrot.lane.b32.xlu1 %v1475_v25, %s1320_s29 }
 0x2bc   : > { %835 = vrot.lane.b32.xlu1 %v1485_v33, %s1320_s29 }
 0x2c0   : > { %882 = vrot.lane.b32.xlu1 %v1475_v25, %s1321_s30 }
 0x2c4   : > { %886 = vrot.lane.b32.xlu1 %v1485_v33, %s1321_s30  ;;  %v608_v33 = vrot.slane %v1518_v39, %v1411_v17 }
 0x2de   : > { %v528_v44 = vpop.permute.xlu1 %527  ;;  %v582_v19 = vpop.permute.xlu0 %581 }
 0x2e2   : > { %v530_v47 = vpop.permute.xlu1 %529 }
 0x2e3   : > { %v540_v48 = vsel %vm537_vm5, %v528_v44, %v530_v47 }
 0x2e4   : > { %v564_v49 = vmul.f32 %v550_v45, %v540_v48 }
 0x2e6   : > { %v572_v51 = vmul.f32 %v569_v36, %v564_v49  ;;  %v534_v52 = vpop.permute.xlu1 %533 }
 0x2e7   : > { %v541_v7 = vsel %vm537_vm5, %v534_v52, %v528_v44 }
 0x2e8   : > { %v576_v55 = vadd.f32 %v572_v51, %v1479_v28  ;;  %v563_v57 = vmul.f32 %v546_v50, %v541_v7 }
 0x2ea   : > { %v571_v61 = vmul.f32 %v569_v36, %v563_v57  ;;  %v532_v0 = vpop.permute.xlu1 %531 }
 0x2eb   : > { %v538_v1 = vsel %vm537_vm5, %v532_v0, %v534_v52  ;;  %v539_v8 = vsel %vm537_vm5, %v530_v47, %v532_v0 }
 0x2ec   : > { %v575_v10 = vadd.f32 %v571_v61, %v522_v60  ;;  %v565_v12 = vmul.f32 %v554_v58, %v539_v8  ;;  %v566_v13 = vmul.f32 %v558_v59, %v538_v1  ;;  %v633_v60 = vpop.permute.xlu0 %632 }
 0x2ee   : > { %v573_v20 = vmul.f32 %v569_v36, %v565_v12  ;;  %v574_v21 = vmul.f32 %v569_v36, %v566_v13  ;;  %v580_v22 = vpop.permute.xlu1 %579 }
 0x2ef   : > { %v590_v23 = vsel %vm587_vm6, %v580_v22, %v582_v19 }
 0x2f0   : > { %v577_v25 = vadd.f32 %v573_v20, %v524_v16  ;;  %v578_v26 = vadd.f32 %v574_v21, %v525_v18  ;;  %v614_v2 = vmul.f32 %v600_v14, %v590_v23  ;;  %v683_v0 = vpop.permute.xlu0 %682  ;;  %v1601_v18 = vld [vmem:[%s1830_s1 + $0x1] ss:$4 sm:$0xf] }
 0x2f1   : > { %v1613_v23 = vmul.f32 %v1523_v40, %v1601_v18 }
 0x2f2   : > { %v622_v28 = vmul.f32 %v619_v38, %v614_v2  ;;  %v586_v29 = vpop.permute.xlu1 %585  ;;  %v709_v2 = vrot.slane %v1523_v40, %v1411_v17 }
 0x2f3   : > { %v591_v30 = vsel %vm587_vm6, %v586_v29, %v580_v22 }
 0x2f4   : > { %v1565_v31 = vadd.f32 %v622_v28, %v576_v55  ;;  %v613_v24 = vmul.f32 %v596_v27, %v591_v30 }
 0x2f6   : > { %v621_v36 = vmul.f32 %v619_v38, %v613_v24  ;;  %v584_v42 = vpop.permute.xlu1 %583 }
 0x2f7   : > { %v588_v44 = vsel %vm587_vm6, %v584_v42, %v586_v29  ;;  %v589_v45 = vsel %vm587_vm6, %v582_v19, %v584_v42 }
 0x2f8   : > { %v1575_v47 = vadd.f32 %v621_v36, %v575_v10  ;;  %v615_v48 = vmul.f32 %v604_v32, %v589_v45  ;;  %v616_v49 = vmul.f32 %v608_v33, %v588_v44  ;;  %v1583_v10 = vpop.permute.xlu0 %732  ;;  %v798_v45 = vrot.slane %v1613_v23, %v1399_v9 }
 0x2fa   : > { %v623_v50 = vmul.f32 %v619_v38, %v615_v48  ;;  %v624_v51 = vmul.f32 %v619_v38, %v616_v49  ;;  %v631_v52 = vpop.permute.xlu1 %630  ;;  %v1588_v38 = vld [vmem:[%s1830_s1 + $0x3] ss:$4 sm:$0xf]  ;;  %v802_v48 = vrot.slane %v1613_v23, %v1409_v15 }
 0x2fb   : > { %v629_v13 = vmul.f32 %v1588_v38, %v1518_v39  ;;  %v701_v39 = vrot.slane %v1523_v40, %v1409_v15  ;;  %v641_v28 = vsel %vm638_vm7, %v631_v52, %v633_v60  ;;  %v747_v24 = vrot.slane %v1588_v38, %v1399_v9 }
 0x2fc   : > { %v1577_v7 = vadd.f32 %v623_v50, %v577_v25  ;;  %v1579_v55 = vadd.f32 %v624_v51, %v578_v26  ;;  %v1594_v14 = vpop.permute.xlu0 %783  ;;  %v697_v25 = vrot.slane %v1523_v40, %v1399_v9  ;;  %v705_v26 = vrot.slane %v1523_v40, %v1401_v11 }
 0x2fd   : > { %v651_v19 = vrot.slane %v629_v13, %v1409_v15  ;;  %v647_v20 = vrot.slane %v629_v13, %v1399_v9  ;;  %v655_v21 = vrot.slane %v629_v13, %v1401_v11  ;;  %v659_v22 = vrot.slane %v629_v13, %v1411_v17 }
 0x2fe   : > { %v637_v57 = vpop.permute.xlu1 %636  ;;  %v751_v33 = vrot.slane %v1588_v38, %v1409_v15  ;;  %v755_v36 = vrot.slane %v1588_v38, %v1401_v11  ;;  %v759_v42 = vrot.slane %v1588_v38, %v1411_v17  ;;  %v810_v13 = vrot.slane %v1613_v23, %v1411_v17 }
 0x2ff   : > { %v642_v29 = vsel %vm638_vm7, %v637_v57, %v631_v52  ;;  %v665_v49 = vmul.f32 %v651_v19, %v641_v28  ;;  %v1657_v62 = vmul.f32 %v1588_v38, %v1601_v18  ;;  %v856_v38 = vrot.slane %v1601_v18, %v1401_v11 }
 0x300   : > { %v1632_v32 = vpop.permute.xlu0 %833  ;;  %v664_v50 = vmul.f32 %v647_v20, %v642_v29 }
 0x302   : > { %v635_v58 = vpop.permute.xlu1 %634 }
 0x303   : > { %v640_v30 = vsel %vm638_vm7, %v633_v60, %v635_v58  ;;  %v639_v40 = vsel %vm638_vm7, %v635_v58, %v637_v57  ;;  %v806_v60 = vrot.slane %v1613_v23, %v1401_v11 }
 0x304   : > { %v666_v51 = vmul.f32 %v655_v21, %v640_v30  ;;  %v667_v58 = vmul.f32 %v659_v22, %v639_v40  ;;  %v860_v21 = vrot.slane %v1601_v18, %v1411_v17  ;;  %v852_v22 = vrot.slane %v1601_v18, %v1409_v15  ;;  %v838_v23 = vpop.permute.xlu0 %837 }
 0x306   : > { %v681_v59 = vpop.permute.xlu1 %680  ;;  %v674_v28 = vmul.f32 %v1509_v34, %v666_v51  ;;  %v675_v30 = vmul.f32 %v1509_v34, %v667_v58 }
 0x307   : > { %v691_v44 = vsel %vm688_vm8, %v681_v59, %v683_v0 }
 0x308   : > { %v715_v63 = vmul.f32 %v701_v39, %v691_v44  ;;  %v673_v39 = vmul.f32 %v1509_v34, %v665_v49  ;;  %v678_v6 = vadd.f32 %v674_v28, %v1577_v7 }
 0x30a   : > { %v687_v61 = vpop.permute.xlu1 %686  ;;  %v723_v49 = vmul.f32 %v1511_v35, %v715_v63  ;;  %v677_v58 = vadd.f32 %v673_v39, %v1565_v31 }
 0x30b   : > { %v692_v52 = vsel %vm688_vm8, %v687_v61, %v681_v59  ;;  %v848_v59 = vrot.slane %v1601_v18, %v1399_v9 }
 0x30c   : > { %v714_v20 = vmul.f32 %v697_v25, %v692_v52  ;;  %v899_v52 = vrot.slane %v1657_v62, %v1399_v9 }
 0x30e   : > { %v685_v1 = vpop.permute.xlu1 %684 }
 0x30f   : > { %v690_v19 = vsel %vm688_vm8, %v683_v0, %v685_v1  ;;  %v672_v0 = vmul.f32 %v1509_v34, %v664_v50  ;;  %v689_v29 = vsel %vm688_vm8, %v685_v1, %v687_v61  ;;  %v911_v50 = vrot.slane %v1657_v62, %v1411_v17 }
 0x310   : > { %v716_v40 = vmul.f32 %v705_v26, %v690_v19  ;;  %v903_v61 = vrot.slane %v1657_v62, %v1409_v15  ;;  %v907_v34 = vrot.slane %v1657_v62, %v1401_v11  ;;  %v722_v1 = vmul.f32 %v1511_v35, %v714_v20 }
 0x311   : > { %v717_v26 = vmul.f32 %v709_v2, %v689_v29  ;;  %v676_v19 = vadd.f32 %v672_v0, %v1575_v47  ;;  %v679_v2 = vadd.f32 %v675_v30, %v1579_v55 }
 0x312   : > { %v1581_v8 = vpop.permute.xlu1 %730  ;;  %v724_v20 = vmul.f32 %v1511_v35, %v716_v40 }
 0x313   : > { %v741_v44 = vsel %vm738_vm9, %v1581_v8, %v1583_v10  ;;  %v726_v0 = vadd.f32 %v722_v1, %v676_v19  ;;  %v725_v28 = vmul.f32 %v1511_v35, %v717_v26 }
 0x314   : > { %v764_v4 = vmul.f32 %v747_v24, %v741_v44  ;;  %v727_v24 = vadd.f32 %v723_v49, %v677_v58  ;;  %v728_v44 = vadd.f32 %v724_v20, %v678_v6 }
 0x315   : > { %v729_v1 = vadd.f32 %v725_v28, %v679_v2 }
 0x316   : > { %v1590_v12 = vpop.permute.xlu1 %734 }
 0x317   : > { %v740_v51 = vsel %vm738_vm9, %v1583_v10, %v1590_v12 }
 0x318   : > { %v765_v47 = vmul.f32 %v751_v33, %v740_v51 }
 0x31a   : > { %v1596_v16 = vpop.permute.xlu1 %736  ;;  %v773_v49 = vmul.f32 %v1513_v37, %v765_v47 }
 0x31b   : > { %v739_v63 = vsel %vm738_vm9, %v1590_v12, %v1596_v16  ;;  %v742_v10 = vsel %vm738_vm9, %v1596_v16, %v1581_v8  ;;  %v885_v12 = vpop.permute.xlu0 %884  ;;  %v772_v16 = vmul.f32 %v1513_v37, %v764_v4 }
 0x31c   : > { %v766_v39 = vmul.f32 %v755_v36, %v739_v63  ;;  %v767_v29 = vmul.f32 %v759_v42, %v742_v10 }
 0x31d   : > { %v776_v26 = vadd.f32 %v772_v16, %v726_v0 }
 0x31e   : > { %v1622_v27 = vpop.permute.xlu1 %781  ;;  %v774_v4 = vmul.f32 %v1513_v37, %v766_v39  ;;  %v775_v51 = vmul.f32 %v1513_v37, %v767_v29 }
 0x31f   : > { %v792_v31 = vsel %vm789_vm10, %v1622_v27, %v1594_v14 }
 0x320   : > { %v815_v33 = vmul.f32 %v798_v45, %v792_v31  ;;  %v779_v10 = vadd.f32 %v775_v51, %v729_v1 }
 0x322   : > { %v786_v57 = vpop.permute.xlu1 %785  ;;  %v823_v63 = vmul.f32 %v1525_v41, %v815_v33 }
 0x323   : > { %v791_v7 = vsel %vm789_vm10, %v1594_v14, %v786_v57 }
 0x324   : > { %v816_v30 = vmul.f32 %v802_v48, %v791_v7  ;;  %v827_v31 = vadd.f32 %v823_v63, %v776_v26 }
 0x326   : > { %v788_v25 = vpop.permute.xlu1 %787  ;;  %v824_v6 = vmul.f32 %v1525_v41, %v816_v30 }
 0x327   : > { %v790_v55 = vsel %vm789_vm10, %v786_v57, %v788_v25  ;;  %v793_v36 = vsel %vm789_vm10, %v788_v25, %v1622_v27 }
 0x328   : > { %v817_v40 = vmul.f32 %v806_v60, %v790_v55  ;;  %v818_v45 = vmul.f32 %v810_v13, %v793_v36  ;;  %v889_v60 = vpop.permute.xlu0 %888 }
 0x32a   : > { %v832_v5 = vpop.permute.xlu1 %831  ;;  %v825_v58 = vmul.f32 %v1525_v41, %v817_v40  ;;  %v826_v19 = vmul.f32 %v1525_v41, %v818_v45 }
 0x32b   : > { %v842_v8 = vsel %vm839_vm11, %v832_v5, %v1632_v32  ;;  %v843_v27 = vsel %vm839_vm11, %v838_v23, %v832_v5 }
 0x32c   : > { %v865_v42 = vmul.f32 %v848_v59, %v842_v8  ;;  %v777_v59 = vadd.f32 %v773_v49, %v727_v24  ;;  %v830_v28 = vadd.f32 %v826_v19, %v779_v10 }
 0x32e   : > { %v836_v14 = vpop.permute.xlu1 %835  ;;  %v873_v37 = vmul.f32 %v1534_v46, %v865_v42  ;;  %v828_v55 = vadd.f32 %v824_v6, %v777_v59  ;;  %v1843_v59 = vmov 3  }
 0x32f   : > { %v840_v57 = vsel %vm839_vm11, %v836_v14, %v838_v23  ;;  %v841_v35 = vsel %vm839_vm11, %v1632_v32, %v836_v14  ;;  %v778_v23 = vadd.f32 %v774_v4, %v728_v44 }
 0x330   : > { %v866_v25 = vmul.f32 %v852_v22, %v841_v35  ;;  %v867_v48 = vmul.f32 %v856_v38, %v840_v57  ;;  %v868_v22 = vmul.f32 %v860_v21, %v843_v27 }
 0x331   : > { %v829_v24 = vadd.f32 %v825_v58, %v778_v23  ;;  %v252_v58 = vld [vmem:[%s236_s27] sm:$0xf] }
 0x332   : > { %v883_v32 = vpop.permute.xlu1 %882  ;;  %v874_v2 = vmul.f32 %v1534_v46, %v866_v25  ;;  %v875_v20 = vmul.f32 %v1534_v46, %v867_v48  ;;  %v876_v41 = vmul.f32 %v1534_v46, %v868_v22  ;;  %v1844_v22 = vmov 7  }
 0x333   : > { %v893_v13 = vsel %vm890_vm12, %v883_v32, %v885_v12  ;;  %v894_v5 = vsel %vm890_vm12, %v889_v60, %v883_v32 }
 0x334   : > { %v916_v38 = vmul.f32 %v899_v52, %v893_v13  ;;  %v919_v47 = vmul.f32 %v911_v50, %v894_v5  ;;  %v877_v52 = vadd.f32 %v873_v37, %v827_v31  ;;  %v878_v8 = vadd.f32 %v874_v2, %v828_v55 }
 0x335   : > { %v879_v16 = vadd.f32 %v875_v20, %v829_v24  ;;  %v880_v36 = vadd.f32 %v876_v41, %v830_v28  ;;  %v1841_v13 = vmov 1   ;;  %v1842_v5 = vmov 2  }
 0x336   : > { %v924_v39 = vmul.f32 %v1541_v54, %v916_v38  ;;  %v887_v7 = vpop.permute.xlu1 %886  ;;  %v927_v29 = vmul.f32 %v1541_v54, %v919_v47  ;;  %v1845_v20 = vmov 6  }
 0x337   : > { %v891_v18 = vsel %vm890_vm12, %v887_v7, %v889_v60  ;;  %v892_v21 = vsel %vm890_vm12, %v885_v12, %v887_v7 }
 0x338   : > { %v917_v0 = vmul.f32 %v903_v61, %v892_v21  ;;  %v918_v50 = vmul.f32 %v907_v34, %v891_v18  ;;  %v928_v33 = vadd.f32 %v924_v39, %v877_v52  ;;  %v931_v30 = vadd.f32 %v927_v29, %v880_v36 }
 0x33a   : > { %v925_v43 = vmul.f32 %v1541_v54, %v917_v0  ;;  %v926_v12 = vmul.f32 %v1541_v54, %v918_v50  ;;  %v932_v61 = vsel %vm445_vm0, %v928_v33, 0.0  ;;  %v937_v35 = vsel %vm445_vm0, %v931_v30, 0.0 }
 0x33c   : > { %v929_v46 = vadd.f32 %v925_v43, %v878_v8  ;;  %v930_v14 = vadd.f32 %v926_v12, %v879_v16 }
 0x33e   : > { %v933_v40 = vsel %vm445_vm0, %v929_v46, 0.0  ;;  %v935_v34 = vsel %vm445_vm0, %v930_v14, 0.0 }
 0x33f   : > { %v934_v62 = vadd.f32 %v933_v40, %v932_v61 }
 0x341   : > { %v936_v57 = vadd.f32 %v935_v34, %v934_v62 }
 0x343   : > { %v938_v44 = vadd.f32 %v937_v35, %v936_v57 }
 0x345   : > { %939 = vadd.xlane.f32.xlu1 %v938_v44 }
 0x356   : > { %973 = vperm.xlu1 %1276, %v1454_v53  }
 0x35a   : > { %1277 = vset.pattern.permute.xlu1 %v1307_v56 }
 0x35b   : > { %985 = vperm.xlu1 %1277, %v1454_v53  }
 0x35f   : > { %1278 = vset.pattern.permute.xlu1 %v1301_v3 }
 0x360   : > { %998 = vperm.xlu1 %1278, %v252_v58  }
 0x364   : > { %1279 = vset.pattern.permute.xlu1 %v1841_v13 }
 0x365   : > { %1022 = vperm.xlu1 %1279, %v252_v58  }
 0x369   : > { %1280 = vset.pattern.permute.xlu1 %v1842_v5 }
 0x36a   : > { %1050 = vperm.xlu1 %1280, %v252_v58  }
 0x36e   : > { %1281 = vset.pattern.permute.xlu1 %v1843_v59 }
 0x36f   : > { %1078 = vperm.xlu1 %1281, %v252_v58  }
 0x373   : > { %1283 = vset.pattern.permute.xlu1 %v1844_v22 }
 0x3d2   : > { %v940_v54 = vpop.xlane.xlu1 %939 }
 0x3d3   : > { %v941_v49 = vmul.f32 0.001953125, %v940_v54 }
 0x3d5   : > { %v942_v4 = vsub.f32 %v928_v33, %v941_v49  ;;  %v943_v42 = vsub.f32 %v929_v46, %v941_v49  ;;  %v944_v45 = vsub.f32 %v930_v14, %v941_v49  ;;  %v945_v27 = vsub.f32 %v931_v30, %v941_v49 }
 0x3d6   : > { %v974_v10 = vpop.permute.xlu1 %973 }
 0x3d7   : > { %v946_v25 = vmul.f32 %v942_v4, %v942_v4  ;;  %v947_v48 = vmul.f32 %v943_v42, %v943_v42  ;;  %v948_v60 = vmul.f32 %v944_v45, %v944_v45  ;;  %v949_v1 = vmul.f32 %v945_v27, %v945_v27 }
 0x3d9   : > { %v950_v26 = vsel %vm445_vm0, %v946_v25, 0.0  ;;  %v951_v51 = vsel %vm445_vm0, %v947_v48, 0.0  ;;  %v953_v63 = vsel %vm445_vm0, %v948_v60, 0.0  ;;  %v955_v3 = vsel %vm445_vm0, %v949_v1, 0.0 }
 0x3da   : > { %v952_v56 = vadd.f32 %v951_v51, %v950_v26  ;;  %v986_v31 = vpop.permute.xlu1 %985 }
 0x3dc   : > { %v954_v32 = vadd.f32 %v953_v63, %v952_v56 }
 0x3de   : > { %v956_v6 = vadd.f32 %v955_v3, %v954_v32 }
 0x3df   : > { %v999_v47 = vpop.permute.xlu1 %998 }
 0x3e0   : > { %957 = vadd.xlane.f32.xlu0 %v956_v6 }
 0x3e4   : > { %v1023_v50 = vpop.permute.xlu1 %1022 }
 0x3e9   : > { %v1051_v40 = vpop.permute.xlu1 %1050 }
 0x3ee   : > { %v1079_v58 = vpop.permute.xlu1 %1078 }
 0x46d   : > { %v958_v37 = vpop.xlane.xlu0 %957 }
 0x46e   : > { %v959_v38 = vmul.f32 0.001953125, %v958_v37 }
 0x470   : > { %v960_v23 = vadd.f32 1e-05, %v959_v38 }
 0x472   : > { %1287 = vrsqrt.f32 %v960_v23 }
 0x47c   : > { %v1288_v19 = vpop.eup %1287 }
 0x47d   : > { %v962_v2 = vmul.f32 %v1288_v19, %v1454_v53 }
 0x47f   : > { %965 = vperm.xlu0 %1275, %v962_v2  }
 0x483   : > { %1282 = vset.pattern.permute.xlu0 %v1845_v20 }
 0x4fe   : > { %v966_v39 = vpop.permute.xlu0 %965 }
 0x4ff   : > { %v968_v7 = vmul.f32 %v966_v39, %v942_v4  ;;  %v969_v55 = vmul.f32 %v966_v39, %v943_v42  ;;  %v970_v24 = vmul.f32 %v966_v39, %v944_v45  ;;  %v971_v18 = vmul.f32 %v966_v39, %v945_v27 }
 0x501   : > { %v976_v21 = vadd.f32 %v974_v10, %v968_v7  ;;  %v977_v41 = vadd.f32 %v974_v10, %v969_v55  ;;  %v978_v52 = vadd.f32 %v974_v10, %v970_v24  ;;  %v979_v0 = vadd.f32 %v974_v10, %v971_v18 }
 0x503   : > { %vm980_vm13 = vcmp.gt.f32.partialorder %v976_v21, 0.0  ;;  %vm981_vm14 = vcmp.gt.f32.partialorder %v977_v41, 0.0  ;;  %vm982_vm15 = vcmp.gt.f32.partialorder %v978_v52, 0.0  ;;  %vm983_vm1 = vcmp.gt.f32.partialorder %v979_v0, 0.0 }
 0x504   : > { %v988_v28 = vmul.f32 %v986_v31, %v976_v21  ;;  %v989_v8 = vmul.f32 %v986_v31, %v977_v41  ;;  %v990_v16 = vmul.f32 %v986_v31, %v978_v52  ;;  %v991_v29 = vmul.f32 %v986_v31, %v979_v0 }
 0x506   : > { %v992_v33 = vsel %vm980_vm13, %v976_v21, %v988_v28  ;;  %v993_v43 = vsel %vm981_vm14, %v977_v41, %v989_v8  ;;  %v994_v12 = vsel %vm982_vm15, %v978_v52, %v990_v16  ;;  %v995_v46 = vsel %vm983_vm1, %v979_v0, %v991_v29 }
 0x507   : > { %v1004_v36 = vrot.slane %v992_v33, %v1399_v9  ;;  %v1008_v14 = vrot.slane %v993_v43, %v1399_v9  ;;  %v1012_v30 = vrot.slane %v994_v12, %v1399_v9  ;;  %v1016_v61 = vrot.slane %v995_v46, %v1399_v9 }
 0x508   : > { %v1028_v62 = vrot.slane %v992_v33, %v1409_v15  ;;  %v1032_v34 = vrot.slane %v993_v43, %v1409_v15  ;;  %v1036_v57 = vrot.slane %v994_v12, %v1409_v15  ;;  %v1040_v35 = vrot.slane %v995_v46, %v1409_v15 }
 0x509   : > { %v1017_v44 = vmul.f32 %v1004_v36, %v999_v47  ;;  %v1018_v54 = vmul.f32 %v1008_v14, %v999_v47  ;;  %v1019_v49 = vmul.f32 %v1012_v30, %v999_v47  ;;  %v1020_v4 = vmul.f32 %v1016_v61, %v999_v47 }
 0x50a   : > { %v1041_v42 = vmul.f32 %v1028_v62, %v1023_v50  ;;  %v1042_v45 = vmul.f32 %v1032_v34, %v1023_v50  ;;  %v1043_v27 = vmul.f32 %v1036_v57, %v1023_v50  ;;  %v1044_v25 = vmul.f32 %v1040_v35, %v1023_v50 }
 0x50b   : > { %v1056_v48 = vrot.slane %v992_v33, %v1401_v11  ;;  %v1060_v9 = vrot.slane %v993_v43, %v1401_v11  ;;  %v1064_v60 = vrot.slane %v994_v12, %v1401_v11  ;;  %v1068_v1 = vrot.slane %v995_v46, %v1401_v11 }
 0x50c   : > { %v1045_v26 = vadd.f32 %v1041_v42, %v1017_v44  ;;  %v1046_v51 = vadd.f32 %v1042_v45, %v1018_v54  ;;  %v1047_v56 = vadd.f32 %v1043_v27, %v1019_v49  ;;  %v1048_v15 = vadd.f32 %v1044_v25, %v1020_v4 }
 0x50d   : > { %v1069_v63 = vmul.f32 %v1056_v48, %v1051_v40  ;;  %v1070_v32 = vmul.f32 %v1060_v9, %v1051_v40  ;;  %v1071_v3 = vmul.f32 %v1064_v60, %v1051_v40  ;;  %v1072_v6 = vmul.f32 %v1068_v1, %v1051_v40 }
 0x50e   : > { %v1084_v13 = vrot.slane %v992_v33, %v1411_v17  ;;  %v1088_v5 = vrot.slane %v993_v43, %v1411_v17  ;;  %v1092_v59 = vrot.slane %v994_v12, %v1411_v17  ;;  %v1096_v37 = vrot.slane %v995_v46, %v1411_v17 }
 0x50f   : > { %v1073_v38 = vadd.f32 %v1069_v63, %v1045_v26  ;;  %v1074_v23 = vadd.f32 %v1070_v32, %v1046_v51  ;;  %v1075_v11 = vadd.f32 %v1071_v3, %v1047_v56  ;;  %v1076_v10 = vadd.f32 %v1072_v6, %v1048_v15  ;;  %v1291_v63 = vld [vmem:[%s1834_s5] sm:$0xff] }
 0x510   : > { %v1097_v19 = vmul.f32 %v1084_v13, %v1079_v58  ;;  %v1098_v2 = vmul.f32 %v1088_v5, %v1079_v58  ;;  %v1099_v20 = vmul.f32 %v1092_v59, %v1079_v58  ;;  %v1100_v31 = vmul.f32 %v1096_v37, %v1079_v58 }
 0x512   : > { %v1101_v47 = vadd.f32 %v1097_v19, %v1073_v38  ;;  %v1102_v39 = vadd.f32 %v1098_v2, %v1074_v23  ;;  %v1103_v7 = vadd.f32 %v1099_v20, %v1075_v11  ;;  %v1104_v55 = vadd.f32 %v1100_v31, %v1076_v10 }
 0x514   : > { %v1105_v24 = vsel %vm445_vm0, %v1101_v47, 0.0  ;;  %v1106_v18 = vsel %vm445_vm0, %v1102_v39, 0.0  ;;  %v1108_v41 = vsel %vm445_vm0, %v1103_v7, 0.0  ;;  %v1110_v52 = vsel %vm445_vm0, %v1104_v55, 0.0 }
 0x515   : > { %v1107_v21 = vadd.f32 %v1106_v18, %v1105_v24 }
 0x517   : > { %v1109_v17 = vadd.f32 %v1108_v41, %v1107_v21 }
 0x519   : > { %v1111_v0 = vadd.f32 %v1110_v52, %v1109_v17 }
 0x51b   : > { %1112 = vadd.xlane.f32.xlu1 %v1111_v0 }
 0x52c   : > { %1146 = vperm.xlu1 %1283, %v1454_v53  }
 0x5a8   : > { %v1113_v50 = vpop.xlane.xlu1 %1112 }
 0x5a9   : > { %v1114_v28 = vmul.f32 0.001953125, %v1113_v50 }
 0x5ab   : > { %v1115_v8 = vsub.f32 %v1101_v47, %v1114_v28  ;;  %v1116_v16 = vsub.f32 %v1102_v39, %v1114_v28  ;;  %v1117_v29 = vsub.f32 %v1103_v7, %v1114_v28  ;;  %v1118_v33 = vsub.f32 %v1104_v55, %v1114_v28 }
 0x5ac   : > { %v1147_v45 = vpop.permute.xlu1 %1146 }
 0x5ad   : > { %v1119_v43 = vmul.f32 %v1115_v8, %v1115_v8  ;;  %v1120_v12 = vmul.f32 %v1116_v16, %v1116_v16  ;;  %v1121_v46 = vmul.f32 %v1117_v29, %v1117_v29  ;;  %v1122_v36 = vmul.f32 %v1118_v33, %v1118_v33 }
 0x5af   : > { %v1123_v14 = vsel %vm445_vm0, %v1119_v43, 0.0  ;;  %v1124_v30 = vsel %vm445_vm0, %v1120_v12, 0.0  ;;  %v1126_v40 = vsel %vm445_vm0, %v1121_v46, 0.0  ;;  %v1128_v34 = vsel %vm445_vm0, %v1122_v36, 0.0 }
 0x5b0   : > { %v1125_v61 = vadd.f32 %v1124_v30, %v1123_v14 }
 0x5b2   : > { %v1127_v62 = vadd.f32 %v1126_v40, %v1125_v61 }
 0x5b4   : > { %v1129_v57 = vadd.f32 %v1128_v34, %v1127_v62 }
 0x5b6   : > { %1130 = vadd.xlane.f32.xlu0 %v1129_v57 }
 0x643   : > { %v1131_v35 = vpop.xlane.xlu0 %1130 }
 0x644   : > { %v1132_v44 = vmul.f32 0.001953125, %v1131_v35 }
 0x646   : > { %v1133_v54 = vadd.f32 1e-05, %v1132_v44 }
 0x648   : > { %1289 = vrsqrt.f32 %v1133_v54 }
 0x652   : > { %v1290_v49 = vpop.eup %1289 }
 0x653   : > { %v1135_v4 = vmul.f32 %v1290_v49, %v1454_v53 }
 0x655   : > { %1138 = vperm.xlu0 %1282, %v1135_v4  }
 0x659   : > { %1284 = vset.pattern.permute.xlu0 %v1844_v22  ;;  %v1292_v22 = vld [vmem:[%s1834_s5 + $0x8] sm:$0xff] }
 0x6d4   : > { %v1139_v42 = vpop.permute.xlu0 %1138 }
 0x6d5   : > { %v1141_v27 = vmul.f32 %v1139_v42, %v1115_v8  ;;  %v1142_v25 = vmul.f32 %v1139_v42, %v1116_v16  ;;  %v1143_v48 = vmul.f32 %v1139_v42, %v1117_v29  ;;  %v1144_v9 = vmul.f32 %v1139_v42, %v1118_v33 }
 0x6d7   : > { %v1149_v60 = vadd.f32 %v1147_v45, %v1141_v27  ;;  %v1150_v1 = vadd.f32 %v1147_v45, %v1142_v25  ;;  %v1151_v26 = vadd.f32 %v1147_v45, %v1143_v48  ;;  %v1152_v51 = vadd.f32 %v1147_v45, %v1144_v9 }
 0x6d9   : > { %v1157_v56 = vcombine.low %v1149_v60, %v1150_v1  ;;  %v1158_v15 = vcombine.low %v1151_v26, %v1152_v51 }
 0x6db   : > { %v1161_v53 = vadd.f32 %v1291_v63, %v1157_v56  ;;  %v1162_v32 = vadd.f32 %v1292_v22, %v1158_v15 }
 0x6dd   : > { %1163 = vst [vmem:[%s1834_s5] sm:$0xff] %v1161_v53  ;;  %1164 = vst [vmem:[%s1834_s5 + $0x8] sm:$0xff] %v1162_v32 }
 0x6de PF: > { %s15_s18 = sadd.s32 1, %s1299_s18  }
 0x6df   : > { %p12_p5 = scmp.ge.s32.totalorder %s15_s18, 4  }
 0x6e1   :  { %14 = sbr.rel (!%p12_p5) target bundleno = 1 (0x1), region = 79 }

</bundles_post_ra>
